<compile_context>
chip_gen: v7x
topology: tpu7x:2x2x1
jax: 0.10.0
libtpu: 0.0.40
codegen_flags: <defaults>
</compile_context>

<pallas_src>
import jax
import jax.numpy as jnp
from jax import lax
from jax.experimental import pallas as pl
from jax.experimental.pallas import tpu as pltpu


def embedder_kernel(tgt_ref, weff_ref, b1_ref, w2_ref, b2_ref, w3_ref, b3_ref, out_ref):
    """One batch tile: fused (embed+flatten+fc1) matmul, then fc2/ReLU, fc3."""
    tgt = tgt_ref[...]                                          # (Bt, S*V) int32
    lane = lax.broadcasted_iota(jnp.int32, tgt.shape, 1)        # single iota
    onehot = (lane == tgt).astype(jnp.float32)                  # (Bt, S*V) flattened one-hot

    # embed + flatten + fc1 in one MXU matmul against the folded table.
    h1 = jnp.dot(onehot, weff_ref[...], preferred_element_type=jnp.float32) + b1_ref[...]
    h1 = jnp.maximum(h1, 0.0)                                   # (Bt, 128)

    h2 = jnp.dot(h1, w2_ref[...], preferred_element_type=jnp.float32) + b2_ref[...]
    h2 = jnp.maximum(h2, 0.0)                                   # (Bt, 128)

    out = jnp.dot(h2, w3_ref[...], preferred_element_type=jnp.float32) + b3_ref[...]
    out_ref[...] = out                                          # lane-dense (Bt, 128) store


def embedder_forward(x, params, *, block_b=None):
    B, S = x.shape
    V, E = params["embed"].shape
    H1 = params["w1"].shape[1]            # 32
    C = params["w3"].shape[1]             # num_classes
    HP = 128                              # lane-padded width for all hidden/output dims
    SV = S * V

    if block_b is None:
        block_b = 128 if B > 128 else max(8, ((B + 7) // 8) * 8)

    # ---- weight preprocessing (pure JAX, once) --------------------------------------
    # Fold the embedding table into fc1: W_eff[s*V+v, :] = embed[v] @ w1[s*E:(s+1)*E, :]
    w_eff = jnp.einsum("ve,seh->svh", params["embed"],
                       params["w1"].reshape(S, E, H1)).reshape(SV, H1)

    def pad_cols(a, n):
        return jnp.pad(a, ((0, 0), (0, n - a.shape[-1])))

    def pad_rows(a, n):
        return jnp.pad(a, ((0, n - a.shape[0]), (0, 0)))

    w_eff_p = pad_cols(w_eff, HP)                               # (S*V, 128)
    b1_p = pad_cols(params["b1"], HP)                           # (1, 128)
    w2_p = pad_cols(pad_rows(params["w2"], HP), HP)             # (128, 128)
    b2_p = pad_cols(params["b2"], HP)
    w3_p = pad_cols(pad_rows(params["w3"], HP), HP)             # (128, 128)
    b3_p = pad_cols(params["b3"], HP)

    # ---- per-lane gather targets (lane-dense int32) ----------------------------------
    n_tiles = pl.cdiv(B, block_b)
    Bp = n_tiles * block_b
    x_pad = jnp.pad(x.astype(jnp.int32), ((0, Bp - B), (0, 0)))
    offsets = (jnp.arange(S, dtype=jnp.int32) * V)[None, :]     # s*V per position
    target = jnp.repeat(x_pad + offsets, V, axis=1)             # (Bp, S*V); tgt[b, s*V+v] = s*V + x[b,s]

    full = lambda i: (0, 0)
    tile = lambda i: (i, 0)

    out_p = pl.pallas_call(
        embedder_kernel,
        out_shape=jax.ShapeDtypeStruct((Bp, HP), jnp.float32),
        grid=(n_tiles,),
        in_specs=[
            pl.BlockSpec((block_b, SV), tile),   # gather targets, batch-tiled
            pl.BlockSpec((SV, HP), full),        # folded embed+fc1 weights
            pl.BlockSpec((1, HP), full),         # b1
            pl.BlockSpec((HP, HP), full),        # w2
            pl.BlockSpec((1, HP), full),         # b2
            pl.BlockSpec((HP, HP), full),        # w3
            pl.BlockSpec((1, HP), full),         # b3
        ],
        out_specs=pl.BlockSpec((block_b, HP), tile),
        compiler_params=pltpu.CompilerParams(dimension_semantics=("parallel",)),
    )(target, w_eff_p, b1_p, w2_p, b2_p, w3_p, b3_p)

    return out_p[:B, :C]


def init_params(key, vocab_size, embedding_dim, in_features, num_classes):
    ks = jax.random.split(key, 4)

    def linear(k, fan_in, fan_out):
        bound = 1.0 / float(fan_in) ** 0.5
        kw, kb = jax.random.split(k)
        w = jax.random.uniform(kw, (fan_in, fan_out), jnp.float32, -bound, bound)
        b = jax.random.uniform(kb, (1, fan_out), jnp.float32, -bound, bound)
        return w, b

    embed = jax.random.normal(ks[0], (vocab_size, embedding_dim), jnp.float32)
    w1, b1 = linear(ks[1], in_features * embedding_dim, 32)
    w2, b2 = linear(ks[2], 32, 16)
    w3, b3 = linear(ks[3], 16, num_classes)
    return dict(embed=embed, w1=w1, b1=b1, w2=w2, b2=b2, w3=w3, b3=b3)


def embedder_ref(x, p):
    """Pure-JAX reference matching the PyTorch forward."""
    B = x.shape[0]
    h = p["embed"][x].reshape(B, -1)
    h = jax.nn.relu(h @ p["w1"] + p["b1"])
    h = jax.nn.relu(h @ p["w2"] + p["b2"])
    return h @ p["w3"] + p["b3"]


if __name__ == "__main__":
    vocab_size, embedding_dim, in_features, num_classes = 32, 8, 8, 10
    batch = 4

    key = jax.random.PRNGKey(0)
    k_params, k_x = jax.random.split(key)
    params = init_params(k_params, vocab_size, embedding_dim, in_features, num_classes)
    x = jax.random.randint(k_x, (batch, in_features), 0, vocab_size, dtype=jnp.int32)

    out = embedder_forward(x, params)
    out = jax.block_until_ready(out)

    ref = embedder_ref(x, params)
    assert out.shape == (batch, num_classes), out.shape
    assert jnp.allclose(out, ref, atol=1e-4, rtol=1e-4), \
        f"max abs err {jnp.max(jnp.abs(out - ref))}"

    print("KERNEL_OK")
</pallas_src>

<mosaic_0001>
module attributes {stable_mosaic.version = 11 : i64} {
  func.func @embedder_kernel(%arg0: i32, %arg1: memref<8x256xi32, #tpu.memory_space<vmem>>, %arg2: memref<256x128xf32, #tpu.memory_space<vmem>>, %arg3: memref<1x128xf32, #tpu.memory_space<vmem>>, %arg4: memref<128x128xf32, #tpu.memory_space<vmem>>, %arg5: memref<1x128xf32, #tpu.memory_space<vmem>>, %arg6: memref<128x128xf32, #tpu.memory_space<vmem>>, %arg7: memref<1x128xf32, #tpu.memory_space<vmem>>, %arg8: memref<8x128xf32, #tpu.memory_space<vmem>>) attributes {dimension_semantics = [#tpu.dimension_semantics<parallel>], iteration_bounds = array<i64: 1>, scalar_prefetch = 0 : i64, scratch_operands = 0 : i64, tpu.core_type = #tpu.core_type<tc>, window_params = [{transform_indices = @transform_0, window_bounds = array<i64: 8, 256>}, {pipeline_mode = #tpu.pipeline_mode<synchronous>, transform_indices = @transform_1, window_bounds = array<i64: 256, 128>}, {pipeline_mode = #tpu.pipeline_mode<synchronous>, transform_indices = @transform_2, window_bounds = array<i64: 1, 128>}, {pipeline_mode = #tpu.pipeline_mode<synchronous>, transform_indices = @transform_3, window_bounds = array<i64: 128, 128>}, {pipeline_mode = #tpu.pipeline_mode<synchronous>, transform_indices = @transform_4, window_bounds = array<i64: 1, 128>}, {pipeline_mode = #tpu.pipeline_mode<synchronous>, transform_indices = @transform_5, window_bounds = array<i64: 128, 128>}, {pipeline_mode = #tpu.pipeline_mode<synchronous>, transform_indices = @transform_6, window_bounds = array<i64: 1, 128>}, {transform_indices = @transform_7, window_bounds = array<i64: 8, 128>}]} {
    %c0 = arith.constant 0 : index
    %c0_0 = arith.constant 0 : index
    %0 = vector.load %arg1[%c0, %c0_0] : memref<8x256xi32, #tpu.memory_space<vmem>>, vector<8x256xi32>
    %1 = tpu.iota {dimensions = array<i32: 1>} : vector<8x256xi32>
    %2 = arith.cmpi eq, %1, %0 : vector<8x256xi32>
    %3 = arith.extui %2 : vector<8x256xi1> to vector<8x256xi32>
    %4 = arith.sitofp %3 : vector<8x256xi32> to vector<8x256xf32>
    %c0_1 = arith.constant 0 : index
    %c0_2 = arith.constant 0 : index
    %5 = vector.load %arg2[%c0_1, %c0_2] : memref<256x128xf32, #tpu.memory_space<vmem>>, vector<256x128xf32>
    %cst = arith.constant dense<0.000000e+00> : vector<8x128xf32>
    %6 = tpu.matmul %4, %5, %cst {dimension_numbers = #tpu.dot_dimension_numbers<[1], [0], [0], [1], [0, 0, 1, 1], [], []>} : vector<8x256xf32>, vector<256x128xf32>, vector<8x128xf32> -> vector<8x128xf32>
    %c0_3 = arith.constant 0 : index
    %c0_4 = arith.constant 0 : index
    %7 = vector.load %arg3[%c0_3, %c0_4] : memref<1x128xf32, #tpu.memory_space<vmem>>, vector<1x128xf32>
    %8 = vector.broadcast %7 : vector<1x128xf32> to vector<8x128xf32>
    %9 = arith.addf %6, %8 : vector<8x128xf32>
    %cst_5 = arith.constant 0.000000e+00 : f32
    %10 = vector.broadcast %cst_5 : f32 to vector<8x128xf32>
    %11 = arith.maximumf %9, %10 : vector<8x128xf32>
    %c0_6 = arith.constant 0 : index
    %c0_7 = arith.constant 0 : index
    %12 = vector.load %arg4[%c0_6, %c0_7] : memref<128x128xf32, #tpu.memory_space<vmem>>, vector<128x128xf32>
    %cst_8 = arith.constant dense<0.000000e+00> : vector<8x128xf32>
    %13 = tpu.matmul %11, %12, %cst_8 {dimension_numbers = #tpu.dot_dimension_numbers<[1], [0], [0], [1], [0, 0, 1, 1], [], []>} : vector<8x128xf32>, vector<128x128xf32>, vector<8x128xf32> -> vector<8x128xf32>
    %c0_9 = arith.constant 0 : index
    %c0_10 = arith.constant 0 : index
    %14 = vector.load %arg5[%c0_9, %c0_10] : memref<1x128xf32, #tpu.memory_space<vmem>>, vector<1x128xf32>
    %15 = vector.broadcast %14 : vector<1x128xf32> to vector<8x128xf32>
    %16 = arith.addf %13, %15 : vector<8x128xf32>
    %cst_11 = arith.constant 0.000000e+00 : f32
    %17 = vector.broadcast %cst_11 : f32 to vector<8x128xf32>
    %18 = arith.maximumf %16, %17 : vector<8x128xf32>
    %c0_12 = arith.constant 0 : index
    %c0_13 = arith.constant 0 : index
    %19 = vector.load %arg6[%c0_12, %c0_13] : memref<128x128xf32, #tpu.memory_space<vmem>>, vector<128x128xf32>
    %cst_14 = arith.constant dense<0.000000e+00> : vector<8x128xf32>
    %20 = tpu.matmul %18, %19, %cst_14 {dimension_numbers = #tpu.dot_dimension_numbers<[1], [0], [0], [1], [0, 0, 1, 1], [], []>} : vector<8x128xf32>, vector<128x128xf32>, vector<8x128xf32> -> vector<8x128xf32>
    %c0_15 = arith.constant 0 : index
    %c0_16 = arith.constant 0 : index
    %21 = vector.load %arg7[%c0_15, %c0_16] : memref<1x128xf32, #tpu.memory_space<vmem>>, vector<1x128xf32>
    %22 = vector.broadcast %21 : vector<1x128xf32> to vector<8x128xf32>
    %23 = arith.addf %20, %22 : vector<8x128xf32>
    %c0_17 = arith.constant 0 : index
    %c0_18 = arith.constant 0 : index
    %24 = vector.load %arg8[%c0_17, %c0_18] : memref<8x128xf32, #tpu.memory_space<vmem>>, vector<8x128xf32>
    tpu.vector_store %arg8[%c0_17, %c0_18], %23 {strides = array<i32>} : memref<8x128xf32, #tpu.memory_space<vmem>>, vector<8x128xf32>,
    return
  }
  func.func @transform_0(%arg0: i32) -> (i32, i32) {
    %c0_i32 = arith.constant 0 : i32
    %c0_i32_0 = arith.constant 0 : i32
    return %arg0, %c0_i32 : i32, i32
  }
  func.func @transform_1(%arg0: i32) -> (i32, i32) {
    %c0_i32 = arith.constant 0 : i32
    %c0_i32_0 = arith.constant 0 : i32
    %c0_i32_1 = arith.constant 0 : i32
    return %c0_i32, %c0_i32_0 : i32, i32
  }
  func.func @transform_2(%arg0: i32) -> (i32, i32) {
    %c0_i32 = arith.constant 0 : i32
    %c0_i32_0 = arith.constant 0 : i32
    %c0_i32_1 = arith.constant 0 : i32
    return %c0_i32, %c0_i32_0 : i32, i32
  }
  func.func @transform_3(%arg0: i32) -> (i32, i32) {
    %c0_i32 = arith.constant 0 : i32
    %c0_i32_0 = arith.constant 0 : i32
    %c0_i32_1 = arith.constant 0 : i32
    return %c0_i32, %c0_i32_0 : i32, i32
  }
  func.func @transform_4(%arg0: i32) -> (i32, i32) {
    %c0_i32 = arith.constant 0 : i32
    %c0_i32_0 = arith.constant 0 : i32
    %c0_i32_1 = arith.constant 0 : i32
    return %c0_i32, %c0_i32_0 : i32, i32
  }
  func.func @transform_5(%arg0: i32) -> (i32, i32) {
    %c0_i32 = arith.constant 0 : i32
    %c0_i32_0 = arith.constant 0 : i32
    %c0_i32_1 = arith.constant 0 : i32
    return %c0_i32, %c0_i32_0 : i32, i32
  }
  func.func @transform_6(%arg0: i32) -> (i32, i32) {
    %c0_i32 = arith.constant 0 : i32
    %c0_i32_0 = arith.constant 0 : i32
    %c0_i32_1 = arith.constant 0 : i32
    return %c0_i32, %c0_i32_0 : i32, i32
  }
  func.func @transform_7(%arg0: i32) -> (i32, i32) {
    %c0_i32 = arith.constant 0 : i32
    %c0_i32_0 = arith.constant 0 : i32
    return %arg0, %c0_i32 : i32, i32
  }
}

</mosaic_0001>

<bundles_post_ra>
// kernel: tpu_custom_call.1
= control target key start
LH: loop header
LB: loop body
LE: loop exit
PB: predicated region body
PF: predicated region fallthrough
CT: control target
= control target key end

     0   :  { %12 = vsyncpa [#allocation3], 0  ;;  %s912_s0 = inlined_call_operand.hbm [shape: s32[8,256], index: 0, kind: input, shape index: {}]   ;;  %s913_s1 = inlined_call_operand.hbm [shape: f32[256,128], index: 1, kind: input, shape index: {}]   ;;  %s914_s2 = inlined_call_operand.vmem [shape: f32[1,128], index: 2, kind: input, shape index: {}]   ;;  %s915_s3 = inlined_call_operand.hbm [shape: f32[128,128], index: 3, kind: input, shape index: {}]   ;;  %s916_s4 = inlined_call_operand.vmem [shape: f32[1,128], index: 4, kind: input, shape index: {}]   ;;  %s917_s5 = inlined_call_operand.hbm [shape: f32[128,128], index: 5, kind: input, shape index: {}]   ;;  %s918_s6 = inlined_call_operand.vmem [shape: f32[1,128], index: 6, kind: input, shape index: {}]   ;;  %s919_s7 = inlined_call_operand.hbm [shape: f32[8,128], index: 7, kind: output, shape index: {}]  }
   0x1   :  { %13 = vsyncpa [#allocation6], 0 }
   0x2   :  { %14 = vsyncpa [#allocation9], 0 }
   0x3   :  { %15 = vsyncpa [#allocation4], 0  ;;  %s761_s24 = smov [#allocation5]   ;;  %s643_s28 = scalar_lea.hbm %s913_s1, 4096 }
   0x4   :  { %s31_s25 = sshll.u32 %s761_s24, 4  ;;  %p644_p0 = scmp.ne.s32.totalorder %s913_s1, %s643_s28  ;;  %s32_s25 = int_to_ptr.vmem [resolvable:$true] %s31_s25 }
   0x5   :  { %p647_p1 = scmp.lt.u32.totalorder %s643_s28, %s913_s1 }
   0x7   :  { %p649_p2 = pnand %p647_p1, %p644_p0 }
   0x9   :  { %652 = shalt.err (!%p649_p2)
}
   0xa   :  { %s653_s10 = scalar_lea.vmem %s32_s25, 4096  ;;  %p658_p4 = scmp.lt.s32.totalorder %s32_s25, %s32_s25 }
   0xb   :  { %p654_p3 = scmp.ne.s32.totalorder %s32_s25, %s653_s10  ;;  %p659_p5 = scmp.lt.s32.totalorder %s653_s10, %s653_s10 }
   0xd   :  { %p660_p6 = por %p659_p5, %p658_p4 }
   0xf   :  { %p661_p7 = pnand %p660_p6, %p654_p3 }
  0x11   :  { %664 = shalt.err (!%p661_p7)
}
  0x12   :  { %s762_s11 = smov 128   ;;  %s763_s12 = smov 8  }
  0x13   :  { %37 = dma.hbm_to_vmem [thread:$0]  %s913_s1, 4096, %s32_s25, [#allocation6], %s762_s11, %s762_s11, %s763_s12  }
  0x14   :  { %s764_s15 = smov [#allocation2]   ;;  %s765_s17 = smov [#allocation7]  }
  0x15   :  { %s22_s16 = sshll.u32 %s764_s15, 4  ;;  %s45_s18 = sshll.u32 %s765_s17, 4  ;;  %s23_s16 = int_to_ptr.vmem [resolvable:$true] %s22_s16  ;;  %s46_s18 = int_to_ptr.vmem [resolvable:$true] %s45_s18 }
  0x16   :  { %s665_s21 = scalar_lea.hbm %s912_s0, 256 }
  0x17   :  { %p666_p8 = scmp.ne.s32.totalorder %s912_s0, %s665_s21  ;;  %p669_p9 = scmp.lt.u32.totalorder %s665_s21, %s912_s0 }
  0x19   :  { %p671_p10 = pnand %p669_p9, %p666_p8 }
  0x1b   :  { %674 = shalt.err (!%p671_p10)
}
  0x1c   :  { %s675_s1 = scalar_lea.vmem %s23_s16, 256  ;;  %p680_p12 = scmp.lt.s32.totalorder %s23_s16, %s23_s16 }
  0x1d   :  { %p676_p11 = scmp.ne.s32.totalorder %s23_s16, %s675_s1  ;;  %p681_p13 = scmp.lt.s32.totalorder %s675_s1, %s675_s1 }
  0x1f   :  { %p682_p0 = por %p681_p13, %p680_p12 }
  0x21   :  { %p683_p1 = pnand %p682_p0, %p676_p11 }
  0x23   :  { %686 = shalt.err (!%p683_p1)
}
  0x24   :  { %25 = dma.hbm_to_vmem [thread:$0]  %s912_s0, 256, %s23_s16, [#allocation3]  }
  0x25   :  { %s687_s30 = scalar_lea.hbm %s915_s3, 2048 }
  0x26   :  { %p688_p2 = scmp.ne.s32.totalorder %s915_s3, %s687_s30  ;;  %p691_p3 = scmp.lt.u32.totalorder %s687_s30, %s915_s3 }
  0x28   :  { %p693_p4 = pnand %p691_p3, %p688_p2 }
  0x2a   :  { %696 = shalt.err (!%p693_p4)
}
  0x2b   :  { %s697_s14 = scalar_lea.vmem %s46_s18, 2048  ;;  %p702_p6 = scmp.lt.s32.totalorder %s46_s18, %s46_s18 }
  0x2c   :  { %p698_p5 = scmp.ne.s32.totalorder %s46_s18, %s697_s14  ;;  %p703_p7 = scmp.lt.s32.totalorder %s697_s14, %s697_s14 }
  0x2e   :  { %p704_p8 = por %p703_p7, %p702_p6 }
  0x30   :  { %p705_p9 = pnand %p704_p8, %p698_p5 }
  0x32   :  { %708 = shalt.err (!%p705_p9)
}
  0x33   :  { %51 = dma.hbm_to_vmem [thread:$0]  %s915_s3, 2048, %s46_s18, [#allocation6], %s762_s11, %s762_s11, %s763_s12  }
  0x34   :  { %s766_s16 = smov [#allocation8]   ;;  %s709_s21 = scalar_lea.hbm %s917_s5, 2048 }
  0x35   :  { %s59_s17 = sshll.u32 %s766_s16, 4  ;;  %p710_p10 = scmp.ne.s32.totalorder %s917_s5, %s709_s21  ;;  %s60_s17 = int_to_ptr.vmem [resolvable:$true] %s59_s17 }
  0x36   :  { %p713_p11 = scmp.lt.u32.totalorder %s709_s21, %s917_s5 }
  0x38   :  { %p715_p12 = pnand %p713_p11, %p710_p10 }
  0x3a   :  { %718 = shalt.err (!%p715_p12)
}
  0x3b   :  { %s719_s1 = scalar_lea.vmem %s60_s17, 2048  ;;  %p724_p0 = scmp.lt.s32.totalorder %s60_s17, %s60_s17 }
  0x3c   :  { %p720_p13 = scmp.ne.s32.totalorder %s60_s17, %s719_s1  ;;  %p725_p1 = scmp.lt.s32.totalorder %s719_s1, %s719_s1 }
  0x3e   :  { %p726_p2 = por %p725_p1, %p724_p0 }
  0x40   :  { %p727_p3 = pnand %p726_p2, %p720_p13 }
  0x42   :  { %730 = shalt.err (!%p727_p3)
}
  0x43   :  { %65 = dma.hbm_to_vmem [thread:$0]  %s917_s5, 2048, %s60_s17, [#allocation9], %s762_s11, %s762_s11, %s763_s12  }
  0x44   :  { %753 = dma.done.wait [#allocation3], 256  }
  0x45   :  { %754 = vsyncadd [#allocation3], 4294967040 }
  0x46   :  { %755 = dma.done.wait [#allocation6], 6144  }
  0x47   :  { %756 = vsyncadd [#allocation6], 4294961152 }
  0x48   :  { %757 = dma.done.wait [#allocation9], 2048  }
  0x49   :  { %758 = vsyncadd [#allocation9], 4294965248  ;;  %v767_v0 = vmov 0.0|0.0   ;;  %v82_v1 = vlaneseq  ;;  %v107_v2 = vld [vmem:[#allocation5 + $0x80] sm:$0xff]  ;;  %v108_v3 = vld [vmem:[#allocation5 + $0x88] sm:$0xff]  ;;  %v768_v33 = vmov 1.0  }
  0x4a   :  { %584 = vmatprep.subr.bf16.mxu1 %v767_v0  ;;  %v91_v4 = vld [vmem:[#allocation5] sm:$0xff]  ;;  %v552_v5 = vpack.c.bf16 %v108_v3, %v107_v2  ;;  %v92_v6 = vld [vmem:[#allocation5 + $0x8] sm:$0xff]  ;;  %v109_v7 = vld [vmem:[#allocation5 + $0x90] sm:$0xff]  ;;  %vm769_vm2 = vmmov 0   ;;  %s771_s28 = smov [#allocation10]  }
  0x4b   :  { %v110_v8 = vld [vmem:[#allocation5 + $0x98] sm:$0xff]  ;;  %v554_v9 = vpack.c.bf16 %v92_v6, %v91_v4  ;;  %v93_v11 = vld [vmem:[#allocation5 + $0x10] sm:$0xff]  ;;  %v111_v13 = vld [vmem:[#allocation5 + $0xa0] sm:$0xff]  ;;  %v870_v15 = vand.u32 127, %v82_v1  ;;  %s395_s29 = sshll.u32 %s771_s28, 4  ;;  %s396_s29 = int_to_ptr.vmem [resolvable:$true] %s395_s29 }
  0x4c   :  { %v556_v10 = vpack.c.bf16 %v110_v8, %v109_v7  ;;  %v94_v12 = vld [vmem:[#allocation5 + $0x18] sm:$0xff]  ;;  %553 = vmatprep.subr.bf16.mxu0 %v552_v5  ;;  %v112_v14 = vld [vmem:[#allocation5 + $0xa8] sm:$0xff]  ;;  %v95_v18 = vld [vmem:[#allocation5 + $0x20] sm:$0xff]  ;;  %s731_s30 = scalar_lea.vmem %s396_s29, 128  ;;  %p736_p5 = scmp.lt.s32.totalorder %s396_s29, %s396_s29 }
  0x4d   :  { %555 = vmatpush3.bf16.msra.mxu0 %v554_v9  ;;  %v558_v16 = vpack.c.bf16 %v94_v12, %v93_v11  ;;  %v560_v17 = vpack.c.bf16 %v112_v14, %v111_v13  ;;  %v96_v19 = vld [vmem:[#allocation5 + $0x28] sm:$0xff]  ;;  %v113_v20 = vld [vmem:[#allocation5 + $0xb0] sm:$0xff]  ;;  %v114_v21 = vld [vmem:[#allocation5 + $0xb8] sm:$0xff]  ;;  %v84_v22 = vadd.s32 128, %v870_v15  ;;  %p732_p4 = scmp.ne.s32.totalorder %s396_s29, %s731_s30  ;;  %p737_p6 = scmp.lt.s32.totalorder %s731_s30, %s731_s30 }
  0x4e   :  { %557 = vmatprep.subr.bf16.mxu0 %v556_v10  ;;  %v562_v23 = vpack.c.bf16 %v96_v19, %v95_v18  ;;  %v564_v24 = vpack.c.bf16 %v114_v21, %v113_v20  ;;  %v97_v25 = vld [vmem:[#allocation5 + $0x30] sm:$0xff]  ;;  %v98_v26 = vld [vmem:[#allocation5 + $0x38] sm:$0xff]  ;;  %v115_v27 = vld [vmem:[#allocation5 + $0xc0] sm:$0xff] }
  0x4f   :  { %v116_v28 = vld [vmem:[#allocation5 + $0xc8] sm:$0xff]  ;;  %v81_v29 = vld [vmem:[#allocation2 + $0x8] sm:$0xff]  ;;  %v201_v30 = vld [vmem:[#allocation7] sm:$0xff]  ;;  %v566_v32 = vpack.c.bf16 %v98_v26, %v97_v25  ;;  %p738_p7 = por %p737_p6, %p736_p5 }
  0x50   :  { %vm86_vm0 = vcmp.eq.s32.totalorder %v84_v22, %v81_v29  ;;  %v202_v31 = vld [vmem:[#allocation7 + $0x8] sm:$0xff]  ;;  %v203_v35 = vld [vmem:[#allocation7 + $0x10] sm:$0xff]  ;;  %v204_v36 = vld [vmem:[#allocation7 + $0x18] sm:$0xff]  ;;  %v568_v37 = vpack.c.bf16 %v116_v28, %v115_v27 }
  0x51   :  { %559 = vmatpush3.bf16.msra.mxu0 %v558_v16  ;;  %409 = vmatprep.mubr.msk.f32.mxu0 %vm86_vm0, %v768_v33  ;;  %v585_v34 = vpack.c.bf16 %v202_v31, %v201_v30  ;;  %v99_v38 = vld [vmem:[#allocation5 + $0x40] sm:$0xff]  ;;  %v100_v39 = vld [vmem:[#allocation5 + $0x48] sm:$0xff]  ;;  %v117_v40 = vld [vmem:[#allocation5 + $0xd0] sm:$0xff]  ;;  %v588_v42 = vpack.c.bf16 %v204_v36, %v203_v35  ;;  %p739_p8 = pnand %p738_p7, %p732_p4 }
  0x52   :  { %561 = vmatprep.subr.bf16.mxu0 %v560_v17  ;;  %v118_v41 = vld [vmem:[#allocation5 + $0xd8] sm:$0xff]  ;;  %v205_v43 = vld [vmem:[#allocation7 + $0x20] sm:$0xff]  ;;  %v206_v44 = vld [vmem:[#allocation7 + $0x28] sm:$0xff]  ;;  %v570_v45 = vpack.c.bf16 %v100_v39, %v99_v38  ;;  %v770_v17 = vmov 0.0  }
  0x53   :  { %586 = vmatpush3.bf16.msra.mxu1 %v585_v34  ;;  %v572_v46 = vpack.c.bf16 %v118_v41, %v117_v40  ;;  %v101_v47 = vld [vmem:[#allocation5 + $0x50] sm:$0xff]  ;;  %v102_v48 = vld [vmem:[#allocation5 + $0x58] sm:$0xff]  ;;  %v119_v49 = vld [vmem:[#allocation5 + $0xe0] sm:$0xff]  ;;  %v591_v51 = vpack.c.bf16 %v206_v44, %v205_v43  ;;  %514 = vmatprep.mubr.msk.f32.mxu1 %vm769_vm2, %v770_v17 }
  0x54   :  { %587 = vmatprep.subr.bf16.mxu1 %v767_v0  ;;  %v120_v50 = vld [vmem:[#allocation5 + $0xe8] sm:$0xff]  ;;  %v207_v52 = vld [vmem:[#allocation7 + $0x30] sm:$0xff]  ;;  %v208_v53 = vld [vmem:[#allocation7 + $0x38] sm:$0xff]  ;;  %v574_v54 = vpack.c.bf16 %v102_v48, %v101_v47 }
  0x55   :  { %563 = vmatpush3.bf16.msra.mxu0 %v562_v23  ;;  %v576_v55 = vpack.c.bf16 %v120_v50, %v119_v49  ;;  %v103_v56 = vld [vmem:[#allocation5 + $0x60] sm:$0xff]  ;;  %v104_v57 = vld [vmem:[#allocation5 + $0x68] sm:$0xff]  ;;  %v121_v58 = vld [vmem:[#allocation5 + $0xf0] sm:$0xff]  ;;  %v594_v60 = vpack.c.bf16 %v208_v53, %v207_v52 }
  0x56   :  { %565 = vmatprep.subr.bf16.mxu0 %v564_v24  ;;  %v122_v59 = vld [vmem:[#allocation5 + $0xf8] sm:$0xff]  ;;  %v209_v61 = vld [vmem:[#allocation7 + $0x40] sm:$0xff]  ;;  %v210_v62 = vld [vmem:[#allocation7 + $0x48] sm:$0xff]  ;;  %v578_v63 = vpack.c.bf16 %v104_v57, %v103_v56 }
  0x57   :  { %589 = vmatpush3.bf16.msra.mxu1 %v588_v42  ;;  %v580_v1 = vpack.c.bf16 %v122_v59, %v121_v58  ;;  %v105_v2 = vld [vmem:[#allocation5 + $0x70] sm:$0xff]  ;;  %v106_v3 = vld [vmem:[#allocation5 + $0x78] sm:$0xff]  ;;  %v597_v4 = vpack.c.bf16 %v210_v62, %v209_v61  ;;  %v213_v10 = vld [vmem:[#allocation7 + $0x60] sm:$0xff] }
  0x58   :  { %590 = vmatprep.subr.bf16.mxu1 %v767_v0  ;;  %v211_v5 = vld [vmem:[#allocation7 + $0x50] sm:$0xff]  ;;  %v212_v6 = vld [vmem:[#allocation7 + $0x58] sm:$0xff]  ;;  %v582_v7 = vpack.c.bf16 %v106_v3, %v105_v2  ;;  %v214_v11 = vld [vmem:[#allocation7 + $0x68] sm:$0xff] }
  0x59   :  { %567 = vmatpush3.bf16.msra.mxu0 %v566_v32  ;;  %v80_v8 = vld [vmem:[#allocation2] sm:$0xff]  ;;  %v600_v9 = vpack.c.bf16 %v212_v6, %v211_v5  ;;  %v603_v12 = vpack.c.bf16 %v214_v11, %v213_v10  ;;  %v216_v14 = vld [vmem:[#allocation7 + $0x78] sm:$0xff]  ;;  %v296_v18 = vld [vmem:[#allocation8 + $0x8] sm:$0xff] }
  0x5a   :  { %569 = vmatprep.subr.bf16.mxu0 %v568_v37  ;;  %vm85_vm1 = vcmp.eq.s32.totalorder %v870_v15, %v80_v8  ;;  %v215_v13 = vld [vmem:[#allocation7 + $0x70] sm:$0xff]  ;;  %v295_v15 = vld [vmem:[#allocation8] sm:$0xff]  ;;  %v298_v21 = vld [vmem:[#allocation8 + $0x18] sm:$0xff] }
  0x5b   :  { %592 = vmatpush3.bf16.msra.mxu1 %v591_v51  ;;  %v606_v16 = vpack.c.bf16 %v216_v14, %v215_v13  ;;  %v297_v19 = vld [vmem:[#allocation8 + $0x10] sm:$0xff]  ;;  %v609_v20 = vpack.c.bf16 %v296_v18, %v295_v15  ;;  %v299_v23 = vld [vmem:[#allocation8 + $0x20] sm:$0xff]  ;;  %v300_v24 = vld [vmem:[#allocation8 + $0x28] sm:$0xff] }
  0x5c   :  { %593 = vmatprep.subr.bf16.mxu1 %v767_v0  ;;  %v612_v22 = vpack.c.bf16 %v298_v21, %v297_v19  ;;  %v615_v25 = vpack.c.bf16 %v300_v24, %v299_v23  ;;  %v301_v26 = vld [vmem:[#allocation8 + $0x30] sm:$0xff]  ;;  %v302_v27 = vld [vmem:[#allocation8 + $0x38] sm:$0xff]  ;;  %v303_v29 = vld [vmem:[#allocation8 + $0x40] sm:$0xff] }
  0x5d   :  { %571 = vmatpush3.bf16.msra.mxu0 %v570_v45  ;;  %v618_v28 = vpack.c.bf16 %v302_v27, %v301_v26  ;;  %v304_v30 = vld [vmem:[#allocation8 + $0x48] sm:$0xff]  ;;  %v305_v32 = vld [vmem:[#allocation8 + $0x50] sm:$0xff]  ;;  %v307_v35 = vld [vmem:[#allocation8 + $0x60] sm:$0xff] }
  0x5e   :  { %573 = vmatprep.subr.bf16.mxu0 %v572_v46  ;;  %v621_v31 = vpack.c.bf16 %v304_v30, %v303_v29  ;;  %v308_v36 = vld [vmem:[#allocation8 + $0x68] sm:$0xff]  ;;  %v408_v39 = vld [vmem:[%s914_s2] ss:$0 sm:$0xff]  ;;  %v310_v45 = vld [vmem:[#allocation8 + $0x78] sm:$0xff] }
  0x5f   :  { %595 = vmatpush3.bf16.msra.mxu1 %v594_v60  ;;  %v627_v37 = vpack.c.bf16 %v308_v36, %v307_v35  ;;  %v309_v44 = vld [vmem:[#allocation8 + $0x70] sm:$0xff] }
  0x60   :  { %596 = vmatprep.subr.bf16.mxu1 %v767_v0  ;;  %v630_v46 = vpack.c.bf16 %v310_v45, %v309_v44  ;;  %v411_v47 = vld [vmem:[%s916_s4] ss:$0 sm:$0xff] }
  0x61   :  { %575 = vmatpush3.bf16.msra.mxu0 %v574_v54  ;;  %v412_v51 = vld [vmem:[%s918_s6] ss:$0 sm:$0xff] }
  0x62   :  { %577 = vmatprep.subr.bf16.mxu0 %v576_v55 }
  0x63   :  { %598 = vmatpush3.bf16.msra.mxu1 %v597_v4 }
  0x64   :  { %599 = vmatprep.subr.bf16.mxu1 %v767_v0 }
  0x65   :  { %579 = vmatpush3.bf16.msra.mxu0 %v578_v63 }
  0x66   :  { %581 = vmatprep.subr.bf16.mxu0 %v580_v1 }
  0x67   :  { %601 = vmatpush3.bf16.msra.mxu1 %v600_v9 }
  0x68   :  { %602 = vmatprep.subr.bf16.mxu1 %v767_v0 }
  0x69   :  { %583 = vmatpush3.bf16.msra.mxu0 %v582_v7 }
  0x6a   :  { %608 = vmatprep.subr.bf16.mxu0 %v767_v0 }
  0x6b   :  { %604 = vmatpush3.bf16.msra.mxu1 %v603_v12 }
  0x6c   :  { %410 = vmatmul.mubr.msk.f32.vlgmr.msra.gmra.mrb[0].mxu0 %vm85_vm1, %v768_v33  ;;  %605 = vmatprep.subr.bf16.mxu1 %v767_v0  ;;  %v306_v33 = vld [vmem:[#allocation8 + $0x58] sm:$0xff] }
  0x6d   :  { %549 = vmatprep.mubr.msk.f32.mxu0 %vm769_vm2, %v770_v17  ;;  %610 = vmatpush3.bf16.msra.mxu0 %v609_v20  ;;  %v624_v34 = vpack.c.bf16 %v306_v33, %v305_v32 }
  0x6e   :  { %611 = vmatprep.subr.bf16.mxu0 %v767_v0 }
  0x6f   :  { %607 = vmatpush3.bf16.msra.mxu1 %v606_v16 }
  0x71   :  { %613 = vmatpush3.bf16.msra.mxu0 %v612_v22 }
  0x72   :  { %614 = vmatprep.subr.bf16.mxu0 %v767_v0 }
  0x75   :  { %616 = vmatpush3.bf16.msra.mxu0 %v615_v25 }
  0x76   :  { %617 = vmatprep.subr.bf16.mxu0 %v767_v0 }
  0x79   :  { %619 = vmatpush3.bf16.msra.mxu0 %v618_v28 }
  0x7a   :  { %620 = vmatprep.subr.bf16.mxu0 %v767_v0 }
  0x7d   :  { %622 = vmatpush3.bf16.msra.mxu0 %v621_v31 }
  0x7e   :  { %623 = vmatprep.subr.bf16.mxu0 %v767_v0 }
  0x81   :  { %625 = vmatpush3.bf16.msra.mxu0 %v624_v34 }
  0x82   :  { %626 = vmatprep.subr.bf16.mxu0 %v767_v0 }
  0x85   :  { %628 = vmatpush3.bf16.msra.mxu0 %v627_v37 }
  0x86   :  { %629 = vmatprep.subr.bf16.mxu0 %v767_v0 }
  0x89   :  { %631 = vmatpush3.bf16.msra.mxu0 %v630_v46 }
 0x13f   :  { %v445_v38 = vpop.f32.mrb[0].mxu0 }
 0x140   :  { %v446_v40 = vpop.f32.mrb[1].mxu0 }
 0x141   :  { %v447_v41 = vadd.f32 %v446_v40, %v445_v38 }
 0x143   :  { %v197_v42 = vadd.f32 %v447_v41, %v408_v39 }
 0x145   :  { %v200_v43 = vmax.f32 %v197_v42, 0.0 }
 0x147   :  { %515 = vmatmul.mubr.f32.vlgmr.msra.gmra.mrb[0].mxu1 %v200_v43 }
 0x21a   :  { %v290_v48 = vpop.f32.mrb[0].mxu1 }
 0x21b   :  { %v291_v0 = vadd.f32 %v411_v47, %v290_v48  ;;  %v516_v49 = vpop.f32.mrb[1].mxu1 }
 0x21d   :  { %v294_v50 = vmax.f32 %v291_v0, 0.0 }
 0x21f   :  { %550 = vmatmul.mubr.f32.vlgmr.msra.gmra.mrb[2].mxu0 %v294_v50 }
 0x2f2   :  { %v384_v52 = vpop.f32.mrb[2].mxu0 }
 0x2f3   :  { %v385_v53 = vadd.f32 %v412_v51, %v384_v52  ;;  %v551_v54 = vpop.f32.mrb[3].mxu0 }
 0x2f5   :  { %388 = vst [vmem:[#allocation10] sm:$0xff] %v385_v53 }
 0x2f6   :  { %742 = shalt.err (!%p739_p8)
}
 0x2f7   :  { %s743_s9 = scalar_lea.hbm %s919_s7, 128 }
 0x2f8   :  { %p744_p9 = scmp.ne.s32.totalorder %s919_s7, %s743_s9  ;;  %p747_p10 = scmp.lt.u32.totalorder %s743_s9, %s919_s7 }
 0x2fa   :  { %p749_p11 = pnand %p747_p10, %p744_p9 }
 0x2fc   :  { %752 = shalt.err (!%p749_p11)
}
 0x2fd   :  { %398 = dma.vmem_to_hbm [thread:$0]  %s396_s29, 128, %s919_s7, [#allocation4]  }
 0x2fe   :  { %759 = dma.done.wait [#allocation4], 128  }
 0x2ff   :  { %760 = vsyncadd [#allocation4], 4294967168 }
 0x300   :  { %402 = vsyncpa [#allocation3], 1 }
 0x301   :  { %403 = vsyncpa [#allocation6], 1 }
 0x302   :  { %404 = vsyncpa [#allocation9], 1 }
 0x303   :  { %405 = vsyncpa [#allocation4], 1 }

</bundles_post_ra>
